<compile_context>
chip_gen: v5e
topology: v5e:2x2
jax: 0.10.0
libtpu: 0.0.40
codegen_flags: <defaults>
</compile_context>

<pallas_src>
import jax
import jax.numpy as jnp
from jax.experimental import pallas as pl
from jax.experimental.pallas import tpu as pltpu


def _bilinear_matrix(out_size: int, in_size: int) -> jnp.ndarray:
    """Row-stochastic (out_size, in_size) matrix reproducing torch bilinear
    upsampling with align_corners=False (half-pixel centers)."""
    scale = in_size / out_size
    src = (jnp.arange(out_size, dtype=jnp.float32) + 0.5) * scale - 0.5
    src = jnp.clip(src, 0.0, float(in_size - 1))
    lo = jnp.floor(src).astype(jnp.int32)
    hi = jnp.minimum(lo + 1, in_size - 1)
    frac = src - lo.astype(jnp.float32)
    rows = jnp.arange(out_size)
    W = jnp.zeros((out_size, in_size), dtype=jnp.float32)
    W = W.at[rows, lo].add(1.0 - frac)
    W = W.at[rows, hi].add(frac)
    return W


def _feature_transform_kernel(scale_ref, bias_ref, wh_ref, wwt_ref, x_ref, o_ref):
    nb, C, H_in, W_in = x_ref.shape
    H_out, W_out = o_ref.shape[2], o_ref.shape[3]
    P = nb * C

    # ---- Width pass: one large lane-dense 2-D matmul on the MXU (f32 acc).
    # Reshape merges leading dims into the sublane axis; free when H_in % 8 == 0.
    x2 = x_ref[...].reshape(P * H_in, W_in)
    tmp = jnp.dot(x2, wwt_ref[...], preferred_element_type=jnp.float32)
    tmp3 = tmp.reshape(P, H_in, W_out)                      # (P, H_in, W_out)

    # ---- Height pass: single batched MXU contraction (no Python unrolling).
    wh_b = jnp.broadcast_to(wh_ref[...], (P, H_out, H_in))  # one broadcast per step
    up = jnp.einsum('poh,phw->pow', wh_b, tmp3,
                    preferred_element_type=jnp.float32)     # (P, H_out, W_out)

    # ---- Fused per-channel normalization: one vectorized FMA over the block.
    up4 = up.reshape(nb, C, H_out, W_out)
    o_ref[...] = (up4 * scale_ref[...] + bias_ref[...]).astype(o_ref.dtype)


def feature_transform(x, mean, std, size, out_dtype=jnp.float32):
    """x: (N, 3, H, W) float32. Returns (N, 3, size, size) in `out_dtype`.

    `out_dtype=jnp.bfloat16` halves output HBM traffic (~2x wall-clock on all
    generations since the kernel is output-DMA bound); default f32 matches
    the PyTorch module bit-for-bit in semantics.
    """
    N, C, H_in, W_in = x.shape
    H_out = W_out = int(size)

    # Interpolation matrices kept in f32: the kernel is memory-bound, so the
    # bf16 MXU path buys no wall-clock and would only cost accuracy.
    wh = _bilinear_matrix(H_out, H_in)                      # (H_out, H_in)
    wwt = _bilinear_matrix(W_out, W_in).T                   # (W_in, W_out)

    # Fold (x - mean)/std into a single FMA: out = up * inv_std + bias.
    inv_std = (1.0 / std).astype(jnp.float32).reshape(1, C, 1, 1)
    bias = (-mean.astype(jnp.float32).reshape(1, C, 1, 1)) * inv_std

    out_itemsize = jnp.dtype(out_dtype).itemsize

    # ---- Honest VMEM accounting (bytes), all f32 except the output block.
    in_pb = C * H_in * W_in * 4                 # input block (double-buffered)
    out_pb = C * H_out * W_out * out_itemsize   # output block (double-buffered)
    tmp_pb = C * H_in * W_out * 4               # width-pass intermediate
    whb_pb = C * H_out * H_in * 4               # broadcast Wh operand
    up_pb = C * H_out * W_out * 4               # f32 height-pass result
    per_image = 2 * (in_pb + out_pb) + tmp_pb + whb_pb + up_pb
    const_b = 2 * (wh.size + wwt.size + 4 * C) * 4  # weights + scale/bias buffers

    try:
        vmem_cap = int(pltpu.get_tpu_info().vmem_capacity_bytes)
    except Exception:  # pragma: no cover - conservative fallback
        vmem_cap = 64 * 1024 * 1024             # v7x per-TC VMEM (smallest gen)
    budget = int(vmem_cap * 0.45)               # headroom for compiler scratch

    nb = int(max(1, min(N, (budget - const_b) // max(per_image, 1))))
    if N >= 2:
        # Keep >= 2 grid steps so the "parallel" N axis can shard across both
        # v7x TensorCores (each TC has its own VMEM and HBM path).
        nb = min(nb, -(-N // 2))
    grid = (pl.cdiv(N, nb),)
    # TODO(synk): for inputs so large that even nb=1 exceeds the VMEM budget,
    # add a second grid axis over H_out row tiles instead of relying on spills.

    vmem_limit = int(min(vmem_cap,
                         max(nb * per_image + const_b + (4 << 20), 16 << 20)))

    cost = pl.CostEstimate(
        flops=2 * N * C * (H_in * W_in * W_out + H_out * H_in * W_out),
        transcendentals=0,
        bytes_accessed=(N * C * H_in * W_in * 4
                        + N * C * H_out * W_out * out_itemsize
                        + (wh.size + wwt.size) * 4),
    )

    return pl.pallas_call(
        _feature_transform_kernel,
        out_shape=jax.ShapeDtypeStruct((N, C, H_out, W_out), out_dtype),
        grid=grid,
        in_specs=[
            pl.BlockSpec((1, C, 1, 1), lambda i: (0, 0, 0, 0)),          # inv_std
            pl.BlockSpec((1, C, 1, 1), lambda i: (0, 0, 0, 0)),          # bias
            pl.BlockSpec((H_out, H_in), lambda i: (0, 0)),               # Wh
            pl.BlockSpec((W_in, W_out), lambda i: (0, 0)),               # Ww^T
            pl.BlockSpec((nb, C, H_in, W_in), lambda i: (i, 0, 0, 0)),   # x chunk
        ],
        out_specs=pl.BlockSpec((nb, C, H_out, W_out), lambda i: (i, 0, 0, 0)),
        compiler_params=pltpu.CompilerParams(
            dimension_semantics=("parallel",),
            vmem_limit_bytes=vmem_limit),
        cost_estimate=cost,
    )(inv_std, bias, wh, wwt, x)


if __name__ == "__main__":
    # Deterministic "parameters" (buffers of the module). 3 channels are
    # hard-wired by the module's mean/std buffers.
    mean = jnp.array([0.1, 0.2, 0.3], dtype=jnp.float32)
    std = jnp.array([0.5, 1.0, 2.0], dtype=jnp.float32)
    size = 32  # small stand-in for the default 224

    key = jax.random.PRNGKey(0)
    x = jax.random.normal(key, (2, 3, 16, 16), dtype=jnp.float32)

    out = feature_transform(x, mean, std, size)
    out = jax.block_until_ready(out)

    # Pure-JAX f32 reference with the same separable-bilinear formulation.
    wh_ref = _bilinear_matrix(size, x.shape[2])
    ww_ref = _bilinear_matrix(size, x.shape[3])
    up_ref = jnp.einsum("oh,nchw,pw->ncop", wh_ref, x, ww_ref)
    ref = (up_ref - mean.reshape(1, 3, 1, 1)) / std.reshape(1, 3, 1, 1)

    assert out.shape == (2, 3, size, size)
    # Tolerance covers MXU default-precision f32 matmuls (which may decompose
    # to bf16 passes); the all-f32 data path typically lands well below this.
    err = float(jnp.max(jnp.abs(out - ref)))
    assert err < 5e-2, f"max abs error too large: {err}"

    print("KERNEL_OK")
</pallas_src>

<mosaic_0001>
module attributes {stable_mosaic.version = 11 : i64} {
  func.func @_feature_transform_kernel(%arg0: i32, %arg1: memref<1x3x1x1xf32, #tpu.memory_space<vmem>>, %arg2: memref<1x3x1x1xf32, #tpu.memory_space<vmem>>, %arg3: memref<32x16xf32, #tpu.memory_space<vmem>>, %arg4: memref<16x32xf32, #tpu.memory_space<vmem>>, %arg5: memref<1x3x16x16xf32, #tpu.memory_space<vmem>>, %arg6: memref<1x3x32x32xf32, #tpu.memory_space<vmem>>) attributes {dimension_semantics = [#tpu.dimension_semantics<parallel>], iteration_bounds = array<i64: 2>, scalar_prefetch = 0 : i64, scratch_operands = 0 : i64, tpu.core_type = #tpu.core_type<tc>, window_params = [{pipeline_mode = #tpu.pipeline_mode<synchronous>, transform_indices = @transform_0, window_bounds = array<i64: 1, 3, 1, 1>}, {pipeline_mode = #tpu.pipeline_mode<synchronous>, transform_indices = @transform_1, window_bounds = array<i64: 1, 3, 1, 1>}, {pipeline_mode = #tpu.pipeline_mode<synchronous>, transform_indices = @transform_2, window_bounds = array<i64: 32, 16>}, {pipeline_mode = #tpu.pipeline_mode<synchronous>, transform_indices = @transform_3, window_bounds = array<i64: 16, 32>}, {transform_indices = @transform_4, window_bounds = array<i64: 1, 3, 16, 16>}, {transform_indices = @transform_5, window_bounds = array<i64: 1, 3, 32, 32>}]} {
    %c0 = arith.constant 0 : index
    %c0_0 = arith.constant 0 : index
    %c0_1 = arith.constant 0 : index
    %c0_2 = arith.constant 0 : index
    %0 = vector.load %arg5[%c0, %c0_0, %c0_1, %c0_2] : memref<1x3x16x16xf32, #tpu.memory_space<vmem>>, vector<1x3x16x16xf32>
    %1 = vector.shape_cast %0 : vector<1x3x16x16xf32> to vector<48x16xf32>
    %c0_3 = arith.constant 0 : index
    %c0_4 = arith.constant 0 : index
    %2 = vector.load %arg4[%c0_3, %c0_4] : memref<16x32xf32, #tpu.memory_space<vmem>>, vector<16x32xf32>
    %cst = arith.constant dense<0.000000e+00> : vector<48x32xf32>
    %3 = tpu.matmul %1, %2, %cst {dimension_numbers = #tpu.dot_dimension_numbers<[1], [0], [0], [1], [0, 0, 1, 1], [], []>} : vector<48x16xf32>, vector<16x32xf32>, vector<48x32xf32> -> vector<48x32xf32>
    %4 = vector.shape_cast %3 : vector<48x32xf32> to vector<3x16x32xf32>
    %c0_5 = arith.constant 0 : index
    %c0_6 = arith.constant 0 : index
    %5 = vector.load %arg3[%c0_5, %c0_6] : memref<32x16xf32, #tpu.memory_space<vmem>>, vector<32x16xf32>
    %6 = vector.shape_cast %5 : vector<32x16xf32> to vector<1x32x16xf32>
    %7 = vector.broadcast %6 : vector<1x32x16xf32> to vector<3x32x16xf32>
    "tpu.trace_start"() <{level = 10 : i32, message = "poh,phw->pow"}> : () -> ()
    %cst_7 = arith.constant dense<0.000000e+00> : vector<3x32x32xf32>
    %8 = tpu.matmul %7, %4, %cst_7 {dimension_numbers = #tpu.dot_dimension_numbers<[2], [1], [1], [2], [0, 0, 0, 1, 1, 2], [0], [0]>} : vector<3x32x16xf32>, vector<3x16x32xf32>, vector<3x32x32xf32> -> vector<3x32x32xf32>
    "tpu.trace_stop"() : () -> ()
    %9 = vector.shape_cast %8 : vector<3x32x32xf32> to vector<1x3x32x32xf32>
    %c0_8 = arith.constant 0 : index
    %c0_9 = arith.constant 0 : index
    %c0_10 = arith.constant 0 : index
    %c0_11 = arith.constant 0 : index
    %10 = vector.load %arg1[%c0_8, %c0_9, %c0_10, %c0_11] : memref<1x3x1x1xf32, #tpu.memory_space<vmem>>, vector<1x3x1x1xf32>
    %11 = vector.broadcast %10 : vector<1x3x1x1xf32> to vector<1x3x32x32xf32>
    %12 = arith.mulf %9, %11 : vector<1x3x32x32xf32>
    %c0_12 = arith.constant 0 : index
    %c0_13 = arith.constant 0 : index
    %c0_14 = arith.constant 0 : index
    %c0_15 = arith.constant 0 : index
    %13 = vector.load %arg2[%c0_12, %c0_13, %c0_14, %c0_15] : memref<1x3x1x1xf32, #tpu.memory_space<vmem>>, vector<1x3x1x1xf32>
    %14 = vector.broadcast %13 : vector<1x3x1x1xf32> to vector<1x3x32x32xf32>
    %15 = arith.addf %12, %14 : vector<1x3x32x32xf32>
    %c0_16 = arith.constant 0 : index
    %c0_17 = arith.constant 0 : index
    %c0_18 = arith.constant 0 : index
    %c0_19 = arith.constant 0 : index
    %16 = vector.load %arg6[%c0_16, %c0_17, %c0_18, %c0_19] : memref<1x3x32x32xf32, #tpu.memory_space<vmem>>, vector<1x3x32x32xf32>
    tpu.vector_store %arg6[%c0_16, %c0_17, %c0_18, %c0_19], %15 {strides = array<i32>} : memref<1x3x32x32xf32, #tpu.memory_space<vmem>>, vector<1x3x32x32xf32>,
    return
  }
  func.func @transform_0(%arg0: i32) -> (i32, i32, i32, i32) {
    %c0_i32 = arith.constant 0 : i32
    %c0_i32_0 = arith.constant 0 : i32
    %c0_i32_1 = arith.constant 0 : i32
    %c0_i32_2 = arith.constant 0 : i32
    %c0_i32_3 = arith.constant 0 : i32
    return %c0_i32, %c0_i32_0, %c0_i32_1, %c0_i32_2 : i32, i32, i32, i32
  }
  func.func @transform_1(%arg0: i32) -> (i32, i32, i32, i32) {
    %c0_i32 = arith.constant 0 : i32
    %c0_i32_0 = arith.constant 0 : i32
    %c0_i32_1 = arith.constant 0 : i32
    %c0_i32_2 = arith.constant 0 : i32
    %c0_i32_3 = arith.constant 0 : i32
    return %c0_i32, %c0_i32_0, %c0_i32_1, %c0_i32_2 : i32, i32, i32, i32
  }
  func.func @transform_2(%arg0: i32) -> (i32, i32) {
    %c0_i32 = arith.constant 0 : i32
    %c0_i32_0 = arith.constant 0 : i32
    %c0_i32_1 = arith.constant 0 : i32
    return %c0_i32, %c0_i32_0 : i32, i32
  }
  func.func @transform_3(%arg0: i32) -> (i32, i32) {
    %c0_i32 = arith.constant 0 : i32
    %c0_i32_0 = arith.constant 0 : i32
    %c0_i32_1 = arith.constant 0 : i32
    return %c0_i32, %c0_i32_0 : i32, i32
  }
  func.func @transform_4(%arg0: i32) -> (i32, i32, i32, i32) {
    %c0_i32 = arith.constant 0 : i32
    %c0_i32_0 = arith.constant 0 : i32
    %c0_i32_1 = arith.constant 0 : i32
    %c0_i32_2 = arith.constant 0 : i32
    return %arg0, %c0_i32, %c0_i32_0, %c0_i32_1 : i32, i32, i32, i32
  }
  func.func @transform_5(%arg0: i32) -> (i32, i32, i32, i32) {
    %c0_i32 = arith.constant 0 : i32
    %c0_i32_0 = arith.constant 0 : i32
    %c0_i32_1 = arith.constant 0 : i32
    %c0_i32_2 = arith.constant 0 : i32
    return %arg0, %c0_i32, %c0_i32_0, %c0_i32_1 : i32, i32, i32, i32
  }
}

</mosaic_0001>

<bundles_post_ra>
// kernel: tpu_custom_call.1
= control target key start
LH: loop header
LB: loop body
LE: loop exit
PB: predicated region body
PF: predicated region fallthrough
CT: control target
= control target key end

     0   :  { %10 = vsyncpa [#allocation3], 0  ;;  %s1003_s0 = inlined_call_operand.vmem [shape: f32[1,3,1,1], index: 0, kind: input, shape index: {}]   ;;  %s1004_s1 = inlined_call_operand.vmem [shape: f32[1,3,1,1], index: 1, kind: input, shape index: {}]   ;;  %s1005_s2 = inlined_call_operand.vmem [shape: f32[32,16], index: 2, kind: input, shape index: {}]   ;;  %s1006_s3 = inlined_call_operand.vmem [shape: f32[16,32], index: 3, kind: input, shape index: {}]   ;;  %s1007_s4 = inlined_call_operand.hbm [shape: f32[2,3,16,16], index: 4, kind: input, shape index: {}]   ;;  %s1008_s5 = inlined_call_operand.hbm [shape: f32[2,3,32,32], index: 5, kind: output, shape index: {}]  }
   0x1   :  { %12 = vsyncpa [#allocation3 + $0x1], 0 }
   0x2   :  { %13 = vsyncpa [#allocation4], 0 }
   0x3   :  { %15 = vsyncpa [#allocation4 + $0x1], 0  ;;  %s804_s18 = smov 0   ;;  %s806_s19 = smov 0  }
   0x4   :  { %s808_s20 = smov 0   ;;  %s810_s21 = smov 0  }
   0x5 LB: > { %s825_s22 = sadd.s32 4294967295, %s767_s21   ;;  %s578_s23 = sadd.s32 4294967294, %s767_s21   ;;  %s767_s21 = sphi %s810_s21, %s1016_s21   ;;  %s763_s20 = sphi %s808_s20, %s1015_s20   ;;  %s759_s19 = sphi %s806_s19, %s1014_s19   ;;  %s755_s18 = sphi %s804_s18, %s1013_s18  }
   0x6   : > { %s829_s24 = sadd.s32 1, %s767_s21   ;;  %s112_s25 = sadd.s32 1, %s763_s20 }
   0x7   : > { %s109_s26 = ssub.s32 %s767_s21, %s829_s24  ;;  %p119_p0 = scmp.ne.s32.totalorder %s763_s20, %s759_s19 }
   0x8   : > { %p110_p1 = scmp.eq.s32.totalorder %s109_s26, 0  ;;  %p120_p2 = scmp.eq.s32.totalorder %s767_s21, 0 }
   0x9   : > { %p125_p3 = scmp.ne.s32.totalorder %s759_s19, %s755_s18  ;;  %p126_p4 = scmp.eq.s32.totalorder %s825_s22, 0 }
   0xa   : > { %s841_s27 = scalar_select %p110_p1, %s763_s20, %s112_s25  }
   0xb   : > { %p121_p5 = por %p120_p2, %p119_p0  ;;  %p843_p6 = por %p126_p4, %p125_p3 }
   0xc   : > { %p149_p7 = scmp.eq.s32.totalorder %s825_s22, 1  ;;  %p155_p8 = scmp.eq.s32.totalorder %s578_s23, 1 }
   0xd   : > { %p580_p9 = scmp.ge.s32.totalorder %s767_s21, 2  ;;  %p623_p10 = scmp.lt.s32.totalorder %s767_s21, 2 }
   0xe   : > { %p850_p11 = por %p149_p7, %p119_p0  ;;  %p854_p12 = por %p155_p8, %p125_p3 }
   0xf   : > { %s187_s6 = sand.u32 1, %s763_s20   ;;  %s607_s7 = smul.u32 48, %s767_s21 }
  0x10   : > { %s606_s8 = smul.u32 48, %s187_s6  ;;  %p863_p13 = pnand %p623_p10, %p121_p5 }
  0x11   : > { %s196_s11 = scalar_lea.hbm %s1007_s4, %s607_s7  ;;  %s188_s16 = scalar_lea.sflag [#allocation3], %s187_s6 }
  0x12   : > { %s197_s13 = sshll.u32 %s196_s11, 4  ;;  %s191_s14 = scalar_lea.vmem [#allocation2], %s606_s8  ;;  %s198_s13 = int_to_ptr.hbm [resolvable:$true] %s197_s13 }
  0x13   : > { %s199_s15 = sshll.u32 %s191_s14, 4  ;;  %s671_s17 = sshra.s32 %s198_s13, 4  ;;  %s200_s15 = int_to_ptr.vmem [resolvable:$true] %s199_s15  ;;  %s672_s17 = int_to_ptr.hbm [resolvable:$true] %s671_s17 }
  0x14   : > { %s673_s23 = scalar_lea.hbm %s672_s17, 48  ;;  %p675_p1 = pneg %p863_p13 }
  0x15   : > { %p674_p0 = scmp.ne.s32.totalorder %s672_s17, %s673_s23  ;;  %s678_s7 = scalar_lea.hbm %s1007_s4, 96 }
  0x16   : > { %p679_p4 = scmp.lt.s32.totalorder %s672_s17, %s1007_s4  ;;  %p680_p5 = scmp.lt.s32.totalorder %s678_s7, %s673_s23 }
  0x17   : > { %p676_p2 = pnand %p675_p1, %p674_p0 }
  0x18   : > { %p681_p7 = por %p680_p5, %p679_p4 }
  0x19   : > { %p677_p3 = pneg %p676_p2 }
  0x1b   : > { %p682_p8 = pnand %p681_p7, %p677_p3 }
  0x1d   : > { %685 = shalt.err (!%p682_p8)
}
  0x1e   : > { %s769_s6 = smov 128   ;;  %s770_s8 = smov 8  }
  0x1f   : > { %618 = dma.hbm_to_vmem [thread:$0]  (!%p863_p13), %s198_s13, 768, %s200_s15, %s188_s16, %s769_s6, %s769_s6, %s770_s8  }
  0x20   : > { %p582_p10 = scmp.ge.s32.totalorder %s767_s21, 1  ;;  %p207_p0 = scmp.lt.s32.totalorder %s767_s21, 3 }
  0x22   : > { %p208_p1 = pnand %p582_p10, %p207_p0 }
  0x23   : > { %s880_s11 = sand.u32 (!%p208_p1), 1, %s759_s19  }
  0x24   : > { %211 = sbr.rel (%p208_p1) target bundleno = 369 (0x171), region = 40  ;;  %s214_s17 = scalar_lea.sflag (!%p208_p1), [#allocation3], %s880_s11 }
  0x25   : > { %s608_s14 = smul.u32 (!%p208_p1), 48, %s880_s11 }
  0x27   : > { %s217_s23 = scalar_lea.vmem (!%p208_p1), [#allocation2], %s608_s14 }
  0x29   : > { %746 = dma.done.wait (%p843_p6), %s214_s17, 768  }
  0x2a   : > { %748 = vsyncadd (%p843_p6), %s214_s17, 4294966528  ;;  %v252_v0 = vld [vmem:[%s1006_s3 + $0x8] sm:$0xff]  ;;  %v251_v1 = vld [vmem:[%s1006_s3] sm:$0xff]  ;;  %vm253_vm0 = vcmask 130048   ;;  %v771_v10 = vmov 0   ;;  %s609_s10 = smul.u32 96, %s880_s11 }
  0x2b   : > { %286 = vmatpush.msra.mxu0 %v252_v0  ;;  %v245_v2 = vld [vmem:[%s217_s23] sm:$0xff]  ;;  %604 = vmatpush.msra.mxu1 %v252_v0  ;;  %v250_v3 = vld [vmem:[%s217_s23 + $0x28] sm:$0xff]  ;;  %v247_v5 = vld [vmem:[%s217_s23 + $0x10] sm:$0xff]  ;;  %vm476_vm1 = vcmask 261120   ;;  %s610_s8 = smul.u32 96, %s825_s22  ;;  %s490_s22 = scalar_lea.sflag [#allocation4], %s880_s11 }
  0x2c   : > { %v246_v4 = vld [vmem:[%s217_s23 + $0x8] sm:$0xff]  ;;  %v248_v6 = vld [vmem:[%s217_s23 + $0x18] sm:$0xff]  ;;  %v249_v7 = vld [vmem:[%s217_s23 + $0x20] sm:$0xff]  ;;  %662 = vset.pattern.permute.xlu0 %v771_v10  ;;  %663 = vset.pattern.permute.xlu1 %v771_v10  ;;  %s943_s6 = scalar_lea.vmem [#allocation5], %s609_s10  ;;  %s721_s26 = scalar_lea.hbm %s1008_s5, 192 }
  0x2d   : > { %287 = vmatpush.msra.mxu0 %v251_v1  ;;  %605 = vmatpush.msra.mxu1 %v251_v1  ;;  %v665_v12 = vld [vmem:[%s1003_s0] ss:$0 sm:$0xff]  ;;  %v666_v14 = vld [vmem:[%s1003_s0 + $0x2] ss:$0 sm:$0xff]  ;;  %v667_v16 = vld [vmem:[%s1003_s0 + $0x1] ss:$0 sm:$0xff]  ;;  %s501_s23 = scalar_lea.hbm %s1008_s5, %s610_s8 }
  0x2e   : > { %583 = vmatmul.msk.f32.vlgmr.msra.gmra.mxu0 %vm253_vm0, %v245_v2  ;;  %588 = vmatmul.msk.f32.vlgmr.msra.gmra.mxu1 %vm253_vm0, %v250_v3  ;;  %v307_v13 = vld [vmem:[%s1005_s2] sm:$0xff]  ;;  %v308_v17 = vld [vmem:[%s1005_s2 + $0x8] sm:$0xff]  ;;  %v309_v21 = vld [vmem:[%s1005_s2 + $0x10] sm:$0xff]  ;;  %s502_s12 = sshll.u32 %s943_s6, 4  ;;  %s504_s13 = sshll.u32 %s501_s23, 4  ;;  %s503_s12 = int_to_ptr.vmem [resolvable:$true] %s502_s12  ;;  %s505_s13 = int_to_ptr.hbm [resolvable:$true] %s504_s13 }
  0x2f   : > { %664 = vset.pattern.permute.xlu2 %v771_v10  ;;  %420 = vperm.xlu0 %662, %v665_v12   ;;  %v668_v18 = vld [vmem:[%s1004_s1] ss:$0 sm:$0xff]  ;;  %v669_v20 = vld [vmem:[%s1004_s1 + $0x1] ss:$0 sm:$0xff]  ;;  %v670_v23 = vld [vmem:[%s1004_s1 + $0x2] ss:$0 sm:$0xff] }
  0x30   : > { %428 = vperm.xlu1 %663, %v666_v14   ;;  %457 = vperm.xlu2 %664, %v669_v20   ;;  %v310_v24 = vld [vmem:[%s1005_s2 + $0x18] sm:$0xff]  ;;  %s715_s15 = sshra.s32 %s505_s13, 4  ;;  %s716_s15 = int_to_ptr.hbm [resolvable:$true] %s715_s15 }
  0x31   : > { %s717_s16 = scalar_lea.hbm %s716_s15, 96  ;;  %p722_p3 = scmp.lt.s32.totalorder %s716_s15, %s1008_s5 }
  0x32   : > { %p718_p6 = scmp.ne.s32.totalorder %s716_s15, %s717_s16  ;;  %p723_p4 = scmp.lt.s32.totalorder %s721_s26, %s717_s16 }
  0x34   : > { %p719_p13 = pnand %p718_p6, %p850_p11  ;;  %p724_p5 = por %p723_p4, %p722_p3 }
  0x36   : > { %584 = vmatmul.msk.f32.gmra.mxu0 %vm253_vm0, %v246_v4  ;;  %p720_p2 = pneg %p719_p13 }
  0x37   : > { %424 = vperm.xlu0 %662, %v667_v16  }
  0x38   : > { %453 = vperm.xlu1 %663, %v668_v18   ;;  %461 = vperm.xlu2 %664, %v670_v23   ;;  %p725_p7 = pnand %p724_p5, %p720_p2 }
  0x3e   : > { %585 = vmatmul.msk.f32.gmra.mxu0 %vm253_vm0, %v247_v5 }
  0x46   : > { %586 = vmatmul.msk.f32.gmra.mxu0 %vm253_vm0, %v248_v6 }
  0x4e   : > { %587 = vmatmul.msk.f32.gmra.mxu0 %vm253_vm0, %v249_v7 }
  0x8a   : > { %v458_v36 = vpop.permute.xlu2 %457 }
  0x92   : > { %v462_v46 = vpop.permute.xlu2 %461 }
  0xa1   : > { %v421_v26 = vpop.permute.xlu0 %420 }
  0xa2   : > { %v429_v25 = vpop.permute.xlu1 %428 }
  0xa9   : > { %v425_v38 = vpop.permute.xlu0 %424 }
  0xaa   : > { %v454_v28 = vpop.permute.xlu1 %453 }
  0xab   : > { %v289_v8 = vpop.f32.mrf.mxu0  ;;  %v304_v9 = vpop.f32.mrf.mxu1 }
  0xac   : > { %395 = vmatpush.msra.mxu3 %v304_v9 }
  0xb3   : > { %v292_v11 = vpop.f32.mrf.mxu0 }
  0xb4   : > { %337 = vmatpush.msrb.mxu1 %v292_v11 }
  0xb6   : > { %338 = vmatpush.msrb.mxu1 %v289_v8 }
  0xb7   : > { %589 = vmatmul.msk.f32.vlgmr.msrb.gmra.mxu1 %vm253_vm0, %v307_v13 }
  0xbb   : > { %v295_v15 = vpop.f32.mrf.mxu0 }
  0xbf   : > { %590 = vmatmul.msk.f32.gmra.mxu1 %vm253_vm0, %v308_v17 }
  0xc3   : > { %v298_v19 = vpop.f32.mrf.mxu0 }
  0xc4   : > { %366 = vmatpush.msra.mxu2 %v298_v19 }
  0xc6   : > { %367 = vmatpush.msra.mxu2 %v295_v15 }
  0xc7   : > { %593 = vmatmul.msk.f32.vlgmr.msra.gmra.mxu2 %vm253_vm0, %v307_v13  ;;  %591 = vmatmul.msk.f32.gmra.mxu1 %vm253_vm0, %v309_v21 }
  0xcb   : > { %v301_v22 = vpop.f32.mrf.mxu0 }
  0xcc   : > { %396 = vmatpush.msra.mxu3 %v301_v22 }
  0xcd   : > { %597 = vmatmul.msk.f32.vlgmr.msra.gmra.mxu3 %vm253_vm0, %v307_v13 }
  0xcf   : > { %594 = vmatmul.msk.f32.gmra.mxu2 %vm253_vm0, %v308_v17  ;;  %592 = vmatmul.msk.f32.gmra.mxu1 %vm253_vm0, %v310_v24 }
  0xd5   : > { %598 = vmatmul.msk.f32.gmra.mxu3 %vm253_vm0, %v308_v17 }
  0xd7   : > { %595 = vmatmul.msk.f32.gmra.mxu2 %vm253_vm0, %v309_v21 }
  0xdd   : > { %599 = vmatmul.msk.f32.gmra.mxu3 %vm253_vm0, %v309_v21 }
  0xdf   : > { %596 = vmatmul.msk.f32.gmra.mxu2 %vm253_vm0, %v310_v24 }
  0xe5   : > { %600 = vmatmul.msk.f32.gmra.mxu3 %vm253_vm0, %v310_v24 }
 0x134   : > { %v340_v27 = vpop.f32.mrf.mxu1 }
 0x135   : > { %v431_v29 = vmul.f32 %v421_v26, %v340_v27 }
 0x137   : > { %v464_v30 = vadd.f32 %v454_v28, %v431_v29 }
 0x139   : > { %477 = vst.msk [vmem:[%s943_s6] sm:$0xff] %vm476_vm1, %v464_v30 }
 0x13c   : > { %v343_v31 = vpop.f32.mrf.mxu1 }
 0x13d   : > { %v432_v32 = vmul.f32 %v421_v26, %v343_v31 }
 0x13f   : > { %v465_v33 = vadd.f32 %v454_v28, %v432_v32 }
 0x141   : > { %478 = vst.msk [vmem:[%s943_s6 + $0x8] sm:$0xff] %vm476_vm1, %v465_v33 }
 0x144   : > { %v346_v34 = vpop.f32.mrf.mxu1 }
 0x145   : > { %v433_v35 = vmul.f32 %v421_v26, %v346_v34 }
 0x147   : > { %v466_v37 = vadd.f32 %v454_v28, %v433_v35 }
 0x149   : > { %479 = vst.msk [vmem:[%s943_s6 + $0x10] sm:$0xff] %vm476_vm1, %v466_v37 }
 0x14a   : > { %v369_v39 = vpop.f32.mrf.mxu2 }
 0x14b   : > { %v435_v40 = vmul.f32 %v425_v38, %v369_v39 }
 0x14c   : > { %v349_v41 = vpop.f32.mrf.mxu1 }
 0x14d   : > { %v468_v42 = vadd.f32 %v458_v36, %v435_v40  ;;  %v434_v43 = vmul.f32 %v421_v26, %v349_v41 }
 0x14f   : > { %481 = vst.msk [vmem:[%s943_s6 + $0x20] sm:$0xff] %vm476_vm1, %v468_v42  ;;  %v467_v44 = vadd.f32 %v454_v28, %v434_v43 }
 0x150   : > { %v398_v45 = vpop.f32.mrf.mxu3 }
 0x151   : > { %v439_v47 = vmul.f32 %v429_v25, %v398_v45  ;;  %480 = vst.msk [vmem:[%s943_s6 + $0x18] sm:$0xff] %vm476_vm1, %v467_v44 }
 0x152   : > { %v372_v48 = vpop.f32.mrf.mxu2 }
 0x153   : > { %v472_v49 = vadd.f32 %v462_v46, %v439_v47  ;;  %v436_v50 = vmul.f32 %v425_v38, %v372_v48 }
 0x155   : > { %485 = vst.msk [vmem:[%s943_s6 + $0x40] sm:$0xff] %vm476_vm1, %v472_v49  ;;  %v469_v51 = vadd.f32 %v458_v36, %v436_v50 }
 0x157   : > { %482 = vst.msk [vmem:[%s943_s6 + $0x28] sm:$0xff] %vm476_vm1, %v469_v51 }
 0x158   : > { %v401_v52 = vpop.f32.mrf.mxu3 }
 0x159   : > { %v440_v53 = vmul.f32 %v429_v25, %v401_v52 }
 0x15a   : > { %v375_v54 = vpop.f32.mrf.mxu2 }
 0x15b   : > { %v473_v55 = vadd.f32 %v462_v46, %v440_v53  ;;  %v437_v56 = vmul.f32 %v425_v38, %v375_v54 }
 0x15d   : > { %486 = vst.msk [vmem:[%s943_s6 + $0x48] sm:$0xff] %vm476_vm1, %v473_v55  ;;  %v470_v57 = vadd.f32 %v458_v36, %v437_v56 }
 0x15f   : > { %483 = vst.msk [vmem:[%s943_s6 + $0x30] sm:$0xff] %vm476_vm1, %v470_v57 }
 0x160   : > { %v404_v58 = vpop.f32.mrf.mxu3 }
 0x161   : > { %v441_v59 = vmul.f32 %v429_v25, %v404_v58 }
 0x162   : > { %v378_v60 = vpop.f32.mrf.mxu2 }
 0x163   : > { %v474_v61 = vadd.f32 %v462_v46, %v441_v59  ;;  %v438_v62 = vmul.f32 %v425_v38, %v378_v60 }
 0x165   : > { %487 = vst.msk [vmem:[%s943_s6 + $0x50] sm:$0xff] %vm476_vm1, %v474_v61  ;;  %v471_v63 = vadd.f32 %v458_v36, %v438_v62 }
 0x167   : > { %484 = vst.msk [vmem:[%s943_s6 + $0x38] sm:$0xff] %vm476_vm1, %v471_v63 }
 0x168   : > { %v407_v0 = vpop.f32.mrf.mxu3 }
 0x169   : > { %v442_v1 = vmul.f32 %v429_v25, %v407_v0 }
 0x16b   : > { %v475_v2 = vadd.f32 %v462_v46, %v442_v1 }
 0x16d   : > { %488 = vst.msk [vmem:[%s943_s6 + $0x58] sm:$0xff] %vm476_vm1, %v475_v2 }
 0x16e   : > { %728 = shalt.err (!%p725_p7)
}
 0x16f   : > { %s772_s11 = smov 128   ;;  %s773_s10 = smov 8  }
 0x170   : > { %613 = dma.vmem_to_hbm [thread:$0]  (%p850_p11), %s503_s12, 1536, %s505_s13, %s490_s22, %s772_s11, %s772_s11, %s773_s10  }
 0x171 PF: > { %s519_s6 = sand.u32 1, %s755_s18   ;;  %p620_p8 = pnand %p580_p9, %p854_p12 }
 0x172   : > { %s520_s8 = scalar_lea.sflag [#allocation4], %s519_s6 }
 0x173   : > { %p621_p10 = pneg %p620_p8 }
 0x175   : > { %750 = dma.done.wait (%p621_p10), %s520_s8, 1536  }
 0x176   : > { %752 = vsyncadd (%p621_p10), %s520_s8, 4294965760  ;;  %p18_p0 = scmp.ge.s32.totalorder %s829_s24, 4   ;;  %s1013_s18 = smov %s759_s19 }
 0x177   : > { %s1014_s19 = smov %s763_s20  ;;  %s1015_s20 = smov %s841_s27 }
 0x178   : > { %s1016_s21 = smov %s829_s24  ;;  %20 = sbr.rel (!%p18_p0) target bundleno = 5 (0x5), region = 85 }
 0x17d   :  { %526 = vsyncpa [#allocation3], 1 }
 0x17e   :  { %528 = vsyncpa [#allocation3 + $0x1], 1 }
 0x17f   :  { %529 = vsyncpa [#allocation4], 1 }
 0x180   :  { %531 = vsyncpa [#allocation4 + $0x1], 1 }

</bundles_post_ra>
